<compile_context>
chip_gen: v7x
topology: tpu7x:2x2x1
jax: 0.10.0
libtpu: 0.0.40
codegen_flags: <defaults>
</compile_context>

<pallas_src>
import functools

import jax
import jax.numpy as jnp
from jax.experimental import pallas as pl
from jax.experimental.pallas import tpu as pltpu


_LANES = 128
_FUSED_MAX_BYTES = 2 * 1024 * 1024      # x-slab budget for the single-kernel path
_BLOCK_TARGET_BYTES = 2 * 1024 * 1024   # per-tile x bytes for the tiled path
_VMEM_LIMIT = 32 * 1024 * 1024          # safe on v5e/v6e (128 MiB) and v7x (64 MiB)


def _round_up8(v):
    return ((v + 7) // 8) * 8


def _fold_lane_groups(v, g, feat):
    """Per-feature sum over the g lane groups of a packed [1, g*feat] row.

    Returns the per-feature totals already broadcast back to every lane group
    (lane l holds the total for feature l % feat).  Only used when g*feat==128,
    so the rolls are plain 128-lane rotations on the XLU (a free slot here).
    """
    if g == 1:
        return v
    acc = v
    for j in range(1, g):
        acc = acc + pltpu.roll(v, shift=j * feat, axis=1)
    return acc


def _fused_kernel(x_ref, p_ref, o_ref, *, m_total, g, feat, eps):
    """Whole-slab Dice: batch stats + BN + gate in one pass (x read once)."""
    x = x_ref[...].astype(jnp.float32)                    # [R, L]
    gamma = p_ref[0:1, :]                                 # [1, L] packed params
    beta = p_ref[1:2, :]
    alpha = p_ref[2:3, :]
    one_m_alpha = p_ref[3:4, :]

    inv_m = jnp.float32(1.0 / m_total)
    s = jnp.sum(x, axis=0, keepdims=True)                 # [1, L]
    mean = _fold_lane_groups(s, g, feat) * inv_m          # per-feature mean (packed)
    d = x - mean                                          # two-pass variance: robust
    m2 = jnp.sum(d * d, axis=0, keepdims=True)
    var = _fold_lane_groups(m2, g, feat) * inv_m          # biased batch variance

    scale = gamma * jax.lax.rsqrt(var + jnp.float32(eps))
    shift = beta - mean * scale

    bn = x * scale + shift
    # Exact sigmoid (EUP exp + exact reciprocal); approx=True risks the 1e-5 tol.
    x_p = pl.reciprocal(1.0 + jnp.exp(-bn), approx=False)
    gate = alpha + one_m_alpha * x_p
    o_ref[...] = (x * gate).astype(o_ref.dtype)


def _stats_kernel(x_ref, s_ref, m2_ref, *, tile_r, rows_valid):
    """Per-tile sums + per-tile-centered squared deviations (ragged tile masked)."""
    i = pl.program_id(0)
    x = x_ref[...].astype(jnp.float32)                    # [tile_r, L]
    row = jax.lax.broadcasted_iota(jnp.int32, x.shape, 0)
    valid = (i * tile_r + row) < rows_valid               # mask OOB rows of last tile
    n = jnp.maximum(jnp.minimum(rows_valid - i * tile_r, tile_r), 1).astype(jnp.float32)

    xm = jnp.where(valid, x, 0.0)
    s = jnp.sum(xm, axis=0, keepdims=True)                # [1, L]
    mean_t = s / n                                        # per-tile, per-lane mean
    d = jnp.where(valid, x - mean_t, 0.0)
    s_ref[...] = s
    m2_ref[...] = jnp.sum(d * d, axis=0, keepdims=True)


def _apply_kernel(x_ref, p_ref, o_ref):
    """Elementwise Dice gate with the BN affine folded into one FMA."""
    x = x_ref[...].astype(jnp.float32)                    # [tile_r, L]
    scale = p_ref[0:1, :]
    shift = p_ref[1:2, :]
    alpha = p_ref[2:3, :]
    one_m_alpha = p_ref[3:4, :]
    bn = x * scale + shift
    x_p = pl.reciprocal(1.0 + jnp.exp(-bn), approx=False)
    gate = alpha + one_m_alpha * x_p
    o_ref[...] = (x * gate).astype(o_ref.dtype)


def _pack_param_rows(rows_e, g, lanes):
    """Stack per-feature rows into one sublane-aligned [8, lanes] f32 slab."""
    packed = [jnp.tile(jnp.asarray(r, jnp.float32).reshape(-1), (g,)) for r in rows_e]
    pad = [jnp.zeros((lanes,), jnp.float32)] * (8 - len(packed))
    return jnp.stack(packed + pad, axis=0)


def _dice_2d(x2d, gamma, beta, alpha, eps, *,
             max_fused_bytes=_FUSED_MAX_BYTES,
             block_target_bytes=_BLOCK_TARGET_BYTES):
    """x2d: [M, E]; gamma/beta/alpha broadcastable to [E]. Returns [M, E]."""
    M, E = x2d.shape
    out_dtype = x2d.dtype
    itemsize = x2d.dtype.itemsize
    elems = M * E

    # Lane-dense packing of the feature axis (e.g. E=32 -> g=4 -> L=128).
    # The reshape is contiguity-preserving (row-major) -> a bitcast, not a copy.
    g = 1
    if E < _LANES and _LANES % E == 0 and M % (_LANES // E) == 0:
        g = _LANES // E
    feat = E
    L = g * E
    rows = M // g
    xp = x2d.reshape(rows, L) if g > 1 else x2d

    gamma_f = jnp.asarray(gamma, jnp.float32).reshape(-1)
    beta_f = jnp.asarray(beta, jnp.float32).reshape(-1)
    alpha_f = jnp.asarray(alpha, jnp.float32).reshape(-1)

    # ---------------- Fused single-kernel path (x read from HBM once). -------
    if rows * L * 4 <= max_fused_bytes:
        params = _pack_param_rows([gamma_f, beta_f, alpha_f, 1.0 - alpha_f], g, L)
        out_p = pl.pallas_call(
            functools.partial(_fused_kernel, m_total=M, g=g, feat=feat, eps=eps),
            out_shape=jax.ShapeDtypeStruct((rows, L), out_dtype),
            compiler_params=pltpu.CompilerParams(vmem_limit_bytes=_VMEM_LIMIT),
            cost_estimate=pl.CostEstimate(
                flops=12 * elems, transcendentals=elems,
                bytes_accessed=2 * elems * itemsize),
        )(xp, params)
        return out_p.reshape(M, E) if g > 1 else out_p

    # ---------------- Tiled two-phase path. -----------------------------------
    tile_r = max(8, (block_target_bytes // (4 * L)) // 8 * 8)   # ~2 MiB blocks
    tile_r = min(tile_r, _round_up8(rows))
    if rows > 16 and pl.cdiv(rows, tile_r) < 2:
        tile_r = _round_up8(pl.cdiv(rows, 2))   # >= 2 tiles so both v7x TCs get work
    num_tiles = pl.cdiv(rows, tile_r)

    parallel = pltpu.CompilerParams(dimension_semantics=("parallel",),
                                    vmem_limit_bytes=_VMEM_LIMIT)

    # Phase 1: per-tile partial statistics (ragged last tile masked in-kernel).
    s_part, m2_part = pl.pallas_call(
        functools.partial(_stats_kernel, tile_r=tile_r, rows_valid=rows),
        grid=(num_tiles,),
        out_shape=(
            jax.ShapeDtypeStruct((num_tiles, 1, L), jnp.float32),
            jax.ShapeDtypeStruct((num_tiles, 1, L), jnp.float32),
        ),
        in_specs=[pl.BlockSpec((tile_r, L), lambda i: (i, 0))],
        out_specs=(
            pl.BlockSpec((None, 1, L), lambda i: (i, 0, 0)),
            pl.BlockSpec((None, 1, L), lambda i: (i, 0, 0)),
        ),
        compiler_params=parallel,
        cost_estimate=pl.CostEstimate(
            flops=6 * elems, transcendentals=0,
            bytes_accessed=elems * itemsize),
    )(xp)

    # Finalize on tiny [T, g, E] arrays in plain XLA (Chan-style combine).
    n = jnp.minimum(tile_r, rows - jnp.arange(num_tiles) * tile_r).astype(jnp.float32)
    cnt = n[:, None, None]                                  # [T, 1, 1]
    s = s_part.reshape(num_tiles, g, feat)
    m2 = m2_part.reshape(num_tiles, g, feat)
    m_f = jnp.float32(M)
    grand_mean = jnp.sum(s, axis=(0, 1)) / m_f              # [E]
    mean_c = s / cnt
    var = (jnp.sum(m2, axis=(0, 1))
           + jnp.sum(cnt * (mean_c - grand_mean) ** 2, axis=(0, 1))) / m_f
    scale = gamma_f * jax.lax.rsqrt(var + jnp.float32(eps))
    shift = beta_f - grand_mean * scale
    params = _pack_param_rows([scale, shift, alpha_f, 1.0 - alpha_f], g, L)

    # Phase 2: elementwise apply (boundary block handled by masked store).
    out_p = pl.pallas_call(
        _apply_kernel,
        grid=(num_tiles,),
        out_shape=jax.ShapeDtypeStruct((rows, L), out_dtype),
        in_specs=[
            pl.BlockSpec((tile_r, L), lambda i: (i, 0)),
            pl.BlockSpec((8, L), lambda i: (0, 0)),         # constant across grid
        ],
        out_specs=pl.BlockSpec((tile_r, L), lambda i: (i, 0)),
        compiler_params=parallel,
        cost_estimate=pl.CostEstimate(
            flops=8 * elems, transcendentals=elems,
            bytes_accessed=2 * elems * itemsize),
    )(xp, params)

    return out_p.reshape(M, E) if g > 1 else out_p


def dice(x, gamma, beta, alpha, *, dim, eps=1e-8,
         max_fused_bytes=_FUSED_MAX_BYTES,
         block_target_bytes=_BLOCK_TARGET_BYTES):
    """Dice activation.

    dim == 2: x [B, E]
    dim == 3: x [B, N, E] (as the PyTorch module sees it before its transpose).
    eps defaults to 1e-8 to match the module's `epsilon=1e-08` default.
    """
    assert dim in (2, 3)
    if dim == 2:
        assert x.ndim == 2
        return _dice_2d(x, gamma, beta, alpha, eps,
                        max_fused_bytes=max_fused_bytes,
                        block_target_bytes=block_target_bytes)
    assert x.ndim == 3
    B, N, E = x.shape
    out2d = _dice_2d(x.reshape(B * N, E), gamma, beta, alpha, eps,
                     max_fused_bytes=max_fused_bytes,
                     block_target_bytes=block_target_bytes)
    return out2d.reshape(B, N, E)


def _reference(x, gamma, beta, alpha, dim, eps=1e-8):
    """Pure-JAX reference mirroring the PyTorch forward (training-mode BN)."""
    if dim == 3:
        B, N, E = x.shape
        x2 = x.reshape(B * N, E)
    else:
        x2 = x
    gamma = jnp.asarray(gamma).reshape(-1)
    beta = jnp.asarray(beta).reshape(-1)
    alpha = jnp.asarray(alpha).reshape(-1)
    mean = jnp.mean(x2, axis=0, keepdims=True)
    var = jnp.mean((x2 - mean) ** 2, axis=0, keepdims=True)
    bn = gamma * (x2 - mean) / jnp.sqrt(var + eps) + beta
    x_p = jax.nn.sigmoid(bn)
    out = alpha * (1 - x_p) * x2 + x_p * x2
    return out.reshape(x.shape)


# TODO(synk): training-mode BatchNorm1d also updates running_mean/running_var as
# a module side effect; only the forward output is produced here.

if __name__ == "__main__":
    key = jax.random.PRNGKey(0)
    k1, k2, k3, k4, k5, k6 = jax.random.split(key, 6)

    emb = 32
    # Non-trivial ("trained-looking") parameters so the full math is exercised.
    gamma = 1.0 + 0.1 * jax.random.normal(k1, (emb,), jnp.float32)
    beta = 0.1 * jax.random.normal(k2, (emb,), jnp.float32)
    alpha = 0.1 * jax.random.normal(k3, (emb,), jnp.float32)

    # 1) dim == 2, small batch -> fused single-kernel path, lane-packed.
    x2 = jax.random.normal(k4, (8, emb), jnp.float32)
    o2 = jax.block_until_ready(dice(x2, gamma, beta, alpha, dim=2))
    r2 = _reference(x2, gamma, beta, alpha, dim=2)
    assert jnp.allclose(o2, r2, atol=1e-5, rtol=1e-5), "dim=2 fused mismatch"

    # 2) dim == 3 (alpha has shape (E, 1) in the module) -> same math on (B*N, E).
    x3 = jax.random.normal(k5, (2, 8, emb), jnp.float32)
    o3 = jax.block_until_ready(dice(x3, gamma, beta, alpha.reshape(emb, 1), dim=3))
    r3 = _reference(x3, gamma, beta, alpha, dim=3)
    assert jnp.allclose(o3, r3, atol=1e-5, rtol=1e-5), "dim=3 fused mismatch"

    # 3) Force the tiled two-phase path (2 "parallel" tiles, ragged masked last
    #    tile) at a still-small shape to check that code path end to end.
    xt = jax.random.normal(k6, (1000, emb), jnp.float32)
    ot = jax.block_until_ready(
        dice(xt, gamma, beta, alpha, dim=2,
             max_fused_bytes=0, block_target_bytes=64 * 1024))
    rt = _reference(xt, gamma, beta, alpha, dim=2)
    assert jnp.allclose(ot, rt, atol=1e-5, rtol=1e-5), "tiled path mismatch"

    # 4) M not divisible by the packing factor -> unpacked fused fallback.
    xo = jax.random.normal(k1, (10, emb), jnp.float32)
    oo = jax.block_until_ready(dice(xo, gamma, beta, alpha, dim=2))
    ro = _reference(xo, gamma, beta, alpha, dim=2)
    assert jnp.allclose(oo, ro, atol=1e-5, rtol=1e-5), "unpacked fallback mismatch"

    print("KERNEL_OK")
</pallas_src>

<mosaic_0001>
module attributes {stable_mosaic.version = 11 : i64} {
  func.func @_fused_kernel(%arg0: memref<2x128xf32, #tpu.memory_space<vmem>>, %arg1: memref<8x128xf32, #tpu.memory_space<vmem>>, %arg2: memref<2x128xf32, #tpu.memory_space<vmem>>) attributes {dimension_semantics = [], scalar_prefetch = 0 : i64, scratch_operands = 0 : i64, tpu.core_type = #tpu.core_type<tc>} {
    %c0 = arith.constant 0 : index
    %c0_0 = arith.constant 0 : index
    %0 = vector.load %arg0[%c0, %c0_0] : memref<2x128xf32, #tpu.memory_space<vmem>>, vector<2x128xf32>
    %c0_1 = arith.constant 0 : index
    %c0_2 = arith.constant 0 : index
    %1 = vector.load %arg1[%c0_1, %c0_2] : memref<8x128xf32, #tpu.memory_space<vmem>>, vector<1x128xf32>
    %c1 = arith.constant 1 : index
    %c0_3 = arith.constant 0 : index
    %2 = vector.load %arg1[%c1, %c0_3] : memref<8x128xf32, #tpu.memory_space<vmem>>, vector<1x128xf32>
    %c2 = arith.constant 2 : index
    %c0_4 = arith.constant 0 : index
    %3 = vector.load %arg1[%c2, %c0_4] : memref<8x128xf32, #tpu.memory_space<vmem>>, vector<1x128xf32>
    %c3 = arith.constant 3 : index
    %c0_5 = arith.constant 0 : index
    %4 = vector.load %arg1[%c3, %c0_5] : memref<8x128xf32, #tpu.memory_space<vmem>>, vector<1x128xf32>
    %cst = arith.constant dense<0.000000e+00> : vector<128xf32>
    %5 = vector.multi_reduction <add>, %0, %cst [0] : vector<2x128xf32> to vector<128xf32>
    %6 = vector.shape_cast %5 : vector<128xf32> to vector<1x128xf32>
    %c32_i32 = arith.constant 32 : i32
    %7 = tpu.dynamic_rotate %6 by %c32_i32 dim 1 : vector<1x128xf32>, i32 -> vector<1x128xf32>
    %8 = arith.addf %6, %7 : vector<1x128xf32>
    %c64_i32 = arith.constant 64 : i32
    %9 = tpu.dynamic_rotate %6 by %c64_i32 dim 1 : vector<1x128xf32>, i32 -> vector<1x128xf32>
    %10 = arith.addf %8, %9 : vector<1x128xf32>
    %c96_i32 = arith.constant 96 : i32
    %11 = tpu.dynamic_rotate %6 by %c96_i32 dim 1 : vector<1x128xf32>, i32 -> vector<1x128xf32>
    %12 = arith.addf %10, %11 : vector<1x128xf32>
    %cst_6 = arith.constant 1.250000e-01 : f32
    %13 = vector.broadcast %cst_6 : f32 to vector<1x128xf32>
    %14 = arith.mulf %12, %13 : vector<1x128xf32>
    %15 = vector.broadcast %14 : vector<1x128xf32> to vector<2x128xf32>
    %16 = arith.subf %0, %15 : vector<2x128xf32>
    %17 = arith.mulf %16, %16 : vector<2x128xf32>
    %cst_7 = arith.constant dense<0.000000e+00> : vector<128xf32>
    %18 = vector.multi_reduction <add>, %17, %cst_7 [0] : vector<2x128xf32> to vector<128xf32>
    %19 = vector.shape_cast %18 : vector<128xf32> to vector<1x128xf32>
    %c32_i32_8 = arith.constant 32 : i32
    %20 = tpu.dynamic_rotate %19 by %c32_i32_8 dim 1 : vector<1x128xf32>, i32 -> vector<1x128xf32>
    %21 = arith.addf %19, %20 : vector<1x128xf32>
    %c64_i32_9 = arith.constant 64 : i32
    %22 = tpu.dynamic_rotate %19 by %c64_i32_9 dim 1 : vector<1x128xf32>, i32 -> vector<1x128xf32>
    %23 = arith.addf %21, %22 : vector<1x128xf32>
    %c96_i32_10 = arith.constant 96 : i32
    %24 = tpu.dynamic_rotate %19 by %c96_i32_10 dim 1 : vector<1x128xf32>, i32 -> vector<1x128xf32>
    %25 = arith.addf %23, %24 : vector<1x128xf32>
    %cst_11 = arith.constant 1.250000e-01 : f32
    %26 = vector.broadcast %cst_11 : f32 to vector<1x128xf32>
    %27 = arith.mulf %25, %26 : vector<1x128xf32>
    %cst_12 = arith.constant 9.99999993E-9 : f32
    %28 = vector.broadcast %cst_12 : f32 to vector<1x128xf32>
    %29 = arith.addf %27, %28 : vector<1x128xf32>
    %30 = math.rsqrt %29 : vector<1x128xf32>
    %31 = arith.mulf %1, %30 : vector<1x128xf32>
    %32 = arith.mulf %14, %31 : vector<1x128xf32>
    %33 = arith.subf %2, %32 : vector<1x128xf32>
    %34 = vector.broadcast %31 : vector<1x128xf32> to vector<2x128xf32>
    %35 = arith.mulf %0, %34 : vector<2x128xf32>
    %36 = vector.broadcast %33 : vector<1x128xf32> to vector<2x128xf32>
    %37 = arith.addf %35, %36 : vector<2x128xf32>
    %cst_13 = arith.constant 0.000000e+00 : f32
    %38 = vector.broadcast %cst_13 : f32 to vector<2x128xf32>
    %39 = arith.subf %38, %37 : vector<2x128xf32>
    %40 = math.exp %39 : vector<2x128xf32>
    %cst_14 = arith.constant 1.000000e+00 : f32
    %41 = vector.broadcast %cst_14 : f32 to vector<2x128xf32>
    %42 = arith.addf %41, %40 : vector<2x128xf32>
    %43 = tpu.reciprocal %42 : vector<2x128xf32> -> vector<2x128xf32>
    %44 = vector.broadcast %4 : vector<1x128xf32> to vector<2x128xf32>
    %45 = arith.mulf %44, %43 : vector<2x128xf32>
    %46 = vector.broadcast %3 : vector<1x128xf32> to vector<2x128xf32>
    %47 = arith.addf %46, %45 : vector<2x128xf32>
    %48 = arith.mulf %0, %47 : vector<2x128xf32>
    %c0_15 = arith.constant 0 : index
    %c0_16 = arith.constant 0 : index
    %49 = vector.load %arg2[%c0_15, %c0_16] : memref<2x128xf32, #tpu.memory_space<vmem>>, vector<2x128xf32>
    tpu.vector_store %arg2[%c0_15, %c0_16], %48 {strides = array<i32>} : memref<2x128xf32, #tpu.memory_space<vmem>>, vector<2x128xf32>,
    return
  }
}

</mosaic_0001>

<bundles_post_ra>
// kernel: tpu_custom_call.1
= control target key start
LH: loop header
LB: loop body
LE: loop exit
PB: predicated region body
PF: predicated region fallthrough
CT: control target
= control target key end

     0   :  { %7 = vsyncpa [#allocation3], 0  ;;  %s281_s0 = inlined_call_operand.hbm [shape: f32[2,128], index: 0, kind: input, shape index: {}]   ;;  %s282_s1 = inlined_call_operand.hbm [shape: f32[8,128], index: 1, kind: input, shape index: {}]   ;;  %s283_s2 = inlined_call_operand.hbm [shape: f32[2,128], index: 2, kind: output, shape index: {}]  }
   0x1   :  { %8 = vsyncpa [#allocation6], 0 }
   0x2   :  { %9 = vsyncpa [#allocation4], 0  ;;  %s216_s9 = smov [#allocation2]   ;;  %s217_s11 = smov [#allocation5]  }
   0x3   :  { %s16_s10 = sshll.u32 %s216_s9, 4  ;;  %s26_s12 = sshll.u32 %s217_s11, 4  ;;  %s17_s10 = int_to_ptr.vmem [resolvable:$true] %s16_s10  ;;  %s27_s12 = int_to_ptr.vmem [resolvable:$true] %s26_s12 }
   0x4   :  { %s144_s15 = scalar_lea.hbm %s281_s0, 32 }
   0x5   :  { %p145_p0 = scmp.ne.s32.totalorder %s281_s0, %s144_s15  ;;  %p148_p1 = scmp.lt.u32.totalorder %s144_s15, %s281_s0 }
   0x7   :  { %p150_p2 = pnand %p148_p1, %p145_p0 }
   0x9   :  { %153 = shalt.err (!%p150_p2)
}
   0xa   :  { %s154_s20 = scalar_lea.vmem %s17_s10, 32  ;;  %p159_p4 = scmp.lt.s32.totalorder %s17_s10, %s17_s10 }
   0xb   :  { %p155_p3 = scmp.ne.s32.totalorder %s17_s10, %s154_s20  ;;  %p160_p5 = scmp.lt.s32.totalorder %s154_s20, %s154_s20 }
   0xd   :  { %p161_p6 = por %p160_p5, %p159_p4 }
   0xf   :  { %p162_p7 = pnand %p161_p6, %p155_p3 }
  0x11   :  { %165 = shalt.err (!%p162_p7)
}
  0x12   :  { %19 = dma.hbm_to_vmem [thread:$0]  %s281_s0, 32, %s17_s10, [#allocation3]  }
  0x13   :  { %s166_s25 = scalar_lea.hbm %s282_s1, 128 }
  0x14   :  { %p167_p8 = scmp.ne.s32.totalorder %s282_s1, %s166_s25  ;;  %p170_p9 = scmp.lt.u32.totalorder %s166_s25, %s282_s1 }
  0x16   :  { %p172_p10 = pnand %p170_p9, %p167_p8 }
  0x18   :  { %175 = shalt.err (!%p172_p10)
}
  0x19   :  { %s176_s30 = scalar_lea.vmem %s27_s12, 128  ;;  %p181_p12 = scmp.lt.s32.totalorder %s27_s12, %s27_s12 }
  0x1a   :  { %p177_p11 = scmp.ne.s32.totalorder %s27_s12, %s176_s30  ;;  %p182_p13 = scmp.lt.s32.totalorder %s176_s30, %s176_s30 }
  0x1c   :  { %p183_p0 = por %p182_p13, %p181_p12 }
  0x1e   :  { %p184_p1 = pnand %p183_p0, %p177_p11 }
  0x20   :  { %187 = shalt.err (!%p184_p1)
}
  0x21   :  { %29 = dma.hbm_to_vmem [thread:$0]  %s282_s1, 128, %s27_s12, [#allocation6]  }
  0x22   :  { %210 = dma.done.wait [#allocation3], 32  }
  0x23   :  { %211 = vsyncadd [#allocation3], 4294967264 }
  0x24   :  { %212 = dma.done.wait [#allocation6], 128  }
  0x25   :  { %213 = vsyncadd [#allocation6], 4294967168  ;;  %vm41_vm0 = vcmask 1041408   ;;  %v261_v0 = vld [vmem:[#allocation2] sm:$0x3]  ;;  %s218_s4 = smov 32   ;;  %v59_v8 = vlaneseq }
  0x26   :  { %v42_v1 = vsel %vm41_vm0, %v261_v0, 0.0  ;;  %s219_s5 = smov 96   ;;  %s220_s1 = smov 64   ;;  %v37_v36 = vld [vmem:[#allocation5] sm:$0x1] }
  0x27   :  { %v43_v2 = vrot.slane %v42_v1, 4  ;;  %v60_v11 = vshrl.u32 %v59_v8, 7  ;;  %v38_v39 = vld [vmem:[#allocation5 + $0x1] sm:$0x1]  ;;  %v130_v50 = vld [vmem:[#allocation5 + $0x3] ss:$0 sm:$0xff] }
  0x28   :  { %v131_v52 = vld [vmem:[#allocation5 + $0x2] ss:$0 sm:$0xff]  ;;  %s221_s6 = smov [#allocation7]  }
  0x29   :  { %v44_v3 = vadd.f32 %v43_v2, %v42_v1  ;;  %v61_v15 = vsub.s32 0, %v60_v11  ;;  %s120_s7 = sshll.u32 %s221_s6, 4  ;;  %s121_s7 = int_to_ptr.vmem [resolvable:$true] %s120_s7 }
  0x2a   :  { %s188_s8 = scalar_lea.vmem %s121_s7, 32  ;;  %p193_p3 = scmp.lt.s32.totalorder %s121_s7, %s121_s7 }
  0x2b   :  { %v45_v4 = vrot.slane %v44_v3, 2  ;;  %p189_p2 = scmp.ne.s32.totalorder %s121_s7, %s188_s8  ;;  %p194_p4 = scmp.lt.s32.totalorder %s188_s8, %s188_s8 }
  0x2d   :  { %v46_v5 = vadd.f32 %v45_v4, %v44_v3  ;;  %p195_p5 = por %p194_p4, %p193_p3 }
  0x2f   :  { %v47_v6 = vrot.slane %v46_v5, 1  ;;  %p196_p6 = pnand %p195_p5, %p189_p2 }
  0x31   :  { %v48_v7 = vadd.f32 %v47_v6, %v46_v5 }
  0x33   :  { %49 = vrot.lane.b32.xlu0 %v48_v7, %s218_s4  ;;  %55 = vrot.lane.b32.xlu1 %v48_v7, %s219_s5 }
  0x37   :  { %52 = vrot.lane.b32.xlu0 %v48_v7, %s220_s1 }
  0xa5   :  { %v50_v9 = vpop.permute.xlu0 %49  ;;  %v56_v13 = vpop.permute.xlu1 %55 }
  0xa6   :  { %v51_v10 = vadd.f32 %v50_v9, %v48_v7 }
  0xa9   :  { %v53_v12 = vpop.permute.xlu0 %52 }
  0xaa   :  { %v54_v14 = vadd.f32 %v53_v12, %v51_v10 }
  0xac   :  { %v57_v16 = vadd.f32 %v56_v13, %v54_v14 }
  0xae   :  { %v58_v17 = vmul.f32 0.125, %v57_v16 }
  0xb0   :  { %v62_v18 = vrot.slane %v58_v17, %v61_v15 }
  0xb2   :  { %v63_v19 = vsub.f32 %v261_v0, %v62_v18 }
  0xb4   :  { %v64_v20 = vmul.f32 %v63_v19, %v63_v19 }
  0xb6   :  { %v65_v21 = vsel %vm41_vm0, %v64_v20, 0.0 }
  0xb7   :  { %v66_v22 = vrot.slane %v65_v21, 4 }
  0xb9   :  { %v67_v23 = vadd.f32 %v66_v22, %v65_v21 }
  0xbb   :  { %v68_v24 = vrot.slane %v67_v23, 2 }
  0xbd   :  { %v69_v25 = vadd.f32 %v68_v24, %v67_v23 }
  0xbf   :  { %v70_v26 = vrot.slane %v69_v25, 1 }
  0xc1   :  { %v71_v27 = vadd.f32 %v70_v26, %v69_v25 }
  0xc3   :  { %75 = vrot.lane.b32.xlu0 %v71_v27, %s220_s1  ;;  %72 = vrot.lane.b32.xlu1 %v71_v27, %s218_s4 }
  0xc7   :  { %78 = vrot.lane.b32.xlu1 %v71_v27, %s219_s5 }
 0x135   :  { %v73_v28 = vpop.permute.xlu1 %72  ;;  %v76_v30 = vpop.permute.xlu0 %75 }
 0x136   :  { %v74_v29 = vadd.f32 %v73_v28, %v71_v27 }
 0x138   :  { %v77_v31 = vadd.f32 %v76_v30, %v74_v29 }
 0x139   :  { %v79_v32 = vpop.permute.xlu1 %78 }
 0x13a   :  { %v80_v33 = vadd.f32 %v79_v32, %v77_v31 }
 0x13c   :  { %v81_v34 = vmul.f32 0.125, %v80_v33 }
 0x13e   :  { %v82_v35 = vadd.f32 1e-08, %v81_v34 }
 0x140   :  { %138 = vrsqrt.f32 %v82_v35 }
 0x14a   :  { %v139_v37 = vpop.eup %138 }
 0x14b   :  { %v84_v38 = vmul.f32 %v139_v37, %v37_v36 }
 0x14d   :  { %v85_v40 = vmul.f32 %v84_v38, %v58_v17  ;;  %v90_v41 = vrot.slane %v84_v38, %v61_v15 }
 0x14f   :  { %v86_v42 = vsub.f32 %v38_v39, %v85_v40  ;;  %v91_v43 = vmul.f32 %v90_v41, %v261_v0 }
 0x151   :  { %v95_v44 = vrot.slane %v86_v42, %v61_v15 }
 0x153   :  { %v96_v45 = vadd.f32 %v95_v44, %v91_v43 }
 0x155   :  { %v97_v46 = vsub.f32 0.0, %v96_v45 }
 0x157   :  { %v98_v47 = vmul.f32 1.442695, %v97_v46 }
 0x159   :  { %140 = vpow2.f32 %v98_v47 }
 0x163   :  { %v141_v48 = vpop.eup %140 }
 0x164   :  { %v100_v49 = vadd.f32 1.0, %v141_v48 }
 0x166   :  { %142 = vrcp.f32 %v100_v49 }
 0x170   :  { %v143_v51 = vpop.eup %142 }
 0x171   :  { %v106_v53 = vmul.f32 %v143_v51, %v130_v50 }
 0x173   :  { %v111_v54 = vadd.f32 %v131_v52, %v106_v53 }
 0x175   :  { %v112_v55 = vmul.f32 %v111_v54, %v261_v0 }
 0x177   :  { %113 = vst [vmem:[#allocation7] sm:$0x3] %v112_v55 }
 0x178   :  { %199 = shalt.err (!%p196_p6)
}
 0x179   :  { %s200_s11 = scalar_lea.hbm %s283_s2, 32 }
 0x17a   :  { %p201_p7 = scmp.ne.s32.totalorder %s283_s2, %s200_s11  ;;  %p204_p8 = scmp.lt.u32.totalorder %s200_s11, %s283_s2 }
 0x17c   :  { %p206_p9 = pnand %p204_p8, %p201_p7 }
 0x17e   :  { %209 = shalt.err (!%p206_p9)
}
 0x17f   :  { %123 = dma.vmem_to_hbm [thread:$0]  %s121_s7, 32, %s283_s2, [#allocation4]  }
 0x180   :  { %214 = dma.done.wait [#allocation4], 32  }
 0x181   :  { %215 = vsyncadd [#allocation4], 4294967264 }
 0x182   :  { %127 = vsyncpa [#allocation3], 1 }
 0x183   :  { %128 = vsyncpa [#allocation6], 1 }
 0x184   :  { %129 = vsyncpa [#allocation4], 1 }

</bundles_post_ra>
